<compile_context>
chip_gen: v6e
topology: v6e:2x2x1
jax: 0.10.0
libtpu: 0.0.40
codegen_flags: <defaults>
</compile_context>

<pallas_src>
import functools

import jax
import jax.numpy as jnp
from jax.experimental import pallas as pl
from jax.experimental.pallas import tpu as pltpu


def _rmsnorm_kernel(x_ref, w_ref, o_ref, *, eps: float):
    # Compute entirely in float32 (as the PyTorch module does), cast at the end.
    xf = x_ref[...].astype(jnp.float32)                       # (tile_rows, dim)
    inv = jax.lax.rsqrt(jnp.mean(xf * xf, axis=-1, keepdims=True) + eps)  # EUP rsqrt
    w1 = 1.0 + w_ref[...].astype(jnp.float32)                 # (1, dim), VMEM-resident
    o_ref[...] = ((xf * inv) * w1).astype(o_ref.dtype)


def _vmem_capacity_bytes() -> int:
    """Physical VMEM per core; conservative (v7x-sized) fallback if unknown."""
    try:
        cap = int(getattr(pltpu.get_tpu_info(), "vmem_capacity_bytes", 0))
        if cap > 0:
            return cap
    except Exception:
        pass
    return 64 << 20


def _pick_tile_rows(rows: int, dim: int, dtype, *,
                    vmem_budget_bytes: int,
                    max_tile_rows: int = 512,
                    min_grid_steps: int = 4) -> int:
    """Largest dtype-aligned row tile whose working set fits the VMEM budget.

    Working set accounted per row of tile:
      * 2x double-buffered input blocks + 2x double-buffered output blocks
        in the native dtype, plus
      * ~4 full-tile float32 temporaries the f32 compute path keeps live
        (x_f32, x^2 / x*inv, (1+w)-scaled product, pre-cast f32 output).
    Also capped so the grid has >= min_grid_steps steps when rows permit
    (keeps both v7x TensorCores busy and the DMA pipeline overlapped).
    """
    itemsize = jnp.dtype(dtype).itemsize
    # Native sublane packing: 8 rows for 32-bit, 16 for bf16, 32 for int8.
    sublane = 8 * max(4 // itemsize, 1)
    per_row_bytes = dim * (2 * 2 * itemsize + 4 * 4)
    tile = max(vmem_budget_bytes // per_row_bytes, sublane)
    tile = min(tile, max_tile_rows)
    tile = max((tile // sublane) * sublane, sublane)

    rows_up = ((rows + sublane - 1) // sublane) * sublane
    # Guarantee >= min_grid_steps grid steps when rows are large enough.
    step_cap = (rows_up // min_grid_steps // sublane) * sublane
    if step_cap >= sublane:
        tile = min(tile, step_cap)
    # No point making the block taller than the (sublane-rounded) row count.
    return max(min(tile, rows_up), sublane)


def gemma_rms_norm(x: jax.Array, weight: jax.Array, eps: float = 1e-6,
                   *, tile_rows: int | None = None) -> jax.Array:
    """RMSNorm over the last axis of x with Gemma's (1 + weight) scaling."""
    orig_shape = x.shape
    dim = orig_shape[-1]
    assert weight.shape == (dim,), f"weight must be ({dim},), got {weight.shape}"
    # Lane-dense output is the biggest store-side lever; all Gemma hidden dims
    # (2048/2304/3072/3584, and the 256 used below) satisfy this.
    assert dim % 128 == 0, (
        f"dim={dim} must be a multiple of 128 for lane-dense stores; pad the "
        "feature axis at model init if a non-aligned dim is ever needed.")
    # TODO(synk): for extremely large f32 dim where even tile_rows=sublane
    # blows the VMEM budget, split the lane axis with a second "arbitrary"
    # grid dim and a small f32 scratch accumulator for sum(x^2) (two-pass).
    # Not needed for current Gemma dims.

    x2d = x.reshape(-1, dim)
    rows = x2d.shape[0]
    w2d = weight.reshape(1, dim)

    # Generation-aware VMEM sizing: v7x has 64 MiB physical VMEM (=> ~16 MiB
    # tile budget / 40 MiB scoped limit); v5e/v6e have 128 MiB (=> 24 / 48).
    vmem_cap = _vmem_capacity_bytes()
    vmem_budget = min(24 << 20, vmem_cap // 4)
    vmem_limit = min(48 << 20, (vmem_cap * 5) // 8)

    if tile_rows is None:
        tile_rows = _pick_tile_rows(rows, dim, x2d.dtype,
                                    vmem_budget_bytes=vmem_budget)

    # No concatenate padding / output slicing: Pallas masks the ragged last
    # block, and this op is purely per-row so the masked rows are harmless.
    grid = (pl.cdiv(rows, tile_rows),)

    out = pl.pallas_call(
        functools.partial(_rmsnorm_kernel, eps=eps),
        out_shape=jax.ShapeDtypeStruct((rows, dim), x.dtype),
        grid_spec=pltpu.PrefetchScalarGridSpec(
            num_scalar_prefetch=0,
            grid=grid,
            in_specs=[
                pl.BlockSpec((tile_rows, dim), lambda i: (i, 0)),
                # Constant block index: weight DMA'd once, VMEM-resident.
                pl.BlockSpec((1, dim), lambda i: (0, 0)),
            ],
            out_specs=pl.BlockSpec((tile_rows, dim), lambda i: (i, 0)),
        ),
        compiler_params=pltpu.CompilerParams(
            # "parallel" is load-bearing on v7x (2 TensorCores share the row grid).
            dimension_semantics=("parallel",),
            # Generation-aware scoped-VMEM bump (v5e default is only 16 MiB;
            # capped at ~40 MiB on v7x to leave headroom under 64 MiB physical).
            vmem_limit_bytes=vmem_limit,
        ),
    )(x2d, w2d)

    return out.reshape(orig_shape)


def _reference(x, weight, eps=1e-6):
    xf = x.astype(jnp.float32)
    y = xf * jax.lax.rsqrt(jnp.mean(xf * xf, axis=-1, keepdims=True) + eps)
    y = y * (1.0 + weight.astype(jnp.float32))
    return y.astype(x.dtype)


if __name__ == "__main__":
    key = jax.random.PRNGKey(0)
    kx, kw, kx2 = jax.random.split(key, 3)

    batch, seq, dim = 2, 8, 256
    x = jax.random.normal(kx, (batch, seq, dim), dtype=jnp.float32).astype(jnp.bfloat16)
    # Module's __init__ uses zeros(dim); use a small deterministic perturbation
    # so the (1 + weight) scaling path is actually exercised.
    weight = 0.1 * jax.random.normal(kw, (dim,), dtype=jnp.float32)

    out = gemma_rms_norm(x, weight, eps=1e-6)
    out = jax.block_until_ready(out)

    ref = _reference(x, weight, eps=1e-6)
    assert out.dtype == x.dtype
    assert out.shape == x.shape
    assert jnp.allclose(out.astype(jnp.float32), ref.astype(jnp.float32),
                        atol=2e-2, rtol=2e-2)

    # Also exercise the ragged-last-block path (rows not a multiple of the
    # sublane-aligned tile) to confirm cdiv gridding without padding copies.
    x_ragged = jax.random.normal(kx2, (2, 10, dim), dtype=jnp.float32).astype(jnp.bfloat16)
    out_r = jax.block_until_ready(gemma_rms_norm(x_ragged, weight, eps=1e-6))
    ref_r = _reference(x_ragged, weight, eps=1e-6)
    assert out_r.shape == x_ragged.shape and out_r.dtype == x_ragged.dtype
    assert jnp.allclose(out_r.astype(jnp.float32), ref_r.astype(jnp.float32),
                        atol=2e-2, rtol=2e-2)

    # Float32 input path (different sublane packing / tile choice).
    x_f32 = jax.random.normal(kx, (batch, seq, dim), dtype=jnp.float32)
    out_f = jax.block_until_ready(gemma_rms_norm(x_f32, weight, eps=1e-6))
    ref_f = _reference(x_f32, weight, eps=1e-6)
    assert out_f.dtype == x_f32.dtype and out_f.shape == x_f32.shape
    assert jnp.allclose(out_f, ref_f, atol=1e-5, rtol=1e-5)

    print("KERNEL_OK")
</pallas_src>

<mosaic_0001>
module attributes {stable_mosaic.version = 11 : i64} {
  func.func @_rmsnorm_kernel(%arg0: i32, %arg1: memref<16x256xbf16, #tpu.memory_space<vmem>>, %arg2: memref<1x256xf32, #tpu.memory_space<vmem>>, %arg3: memref<16x256xbf16, #tpu.memory_space<vmem>>) attributes {dimension_semantics = [#tpu.dimension_semantics<parallel>], iteration_bounds = array<i64: 1>, scalar_prefetch = 0 : i64, scratch_operands = 0 : i64, tpu.core_type = #tpu.core_type<tc>, window_params = [{transform_indices = @transform_0, window_bounds = array<i64: 16, 256>}, {pipeline_mode = #tpu.pipeline_mode<synchronous>, transform_indices = @transform_1, window_bounds = array<i64: 1, 256>}, {transform_indices = @transform_2, window_bounds = array<i64: 16, 256>}]} {
    %c0 = arith.constant 0 : index
    %c0_0 = arith.constant 0 : index
    %0 = vector.load %arg1[%c0, %c0_0] : memref<16x256xbf16, #tpu.memory_space<vmem>>, vector<16x256xbf16>
    %1 = arith.extf %0 : vector<16x256xbf16> to vector<16x256xf32>
    %2 = arith.mulf %1, %1 : vector<16x256xf32>
    %cst = arith.constant dense<0.000000e+00> : vector<16xf32>
    %3 = vector.multi_reduction <add>, %2, %cst [1] : vector<16x256xf32> to vector<16xf32>
    %4 = vector.shape_cast %3 : vector<16xf32> to vector<16x1xf32>
    %cst_1 = arith.constant 2.560000e+02 : f32
    %5 = vector.broadcast %cst_1 : f32 to vector<16x1xf32>
    %6 = arith.divf %4, %5 : vector<16x1xf32>
    %cst_2 = arith.constant 9.99999997E-7 : f32
    %7 = vector.broadcast %cst_2 : f32 to vector<16x1xf32>
    %8 = arith.addf %6, %7 : vector<16x1xf32>
    %9 = math.rsqrt %8 : vector<16x1xf32>
    %c0_3 = arith.constant 0 : index
    %c0_4 = arith.constant 0 : index
    %10 = vector.load %arg2[%c0_3, %c0_4] : memref<1x256xf32, #tpu.memory_space<vmem>>, vector<1x256xf32>
    %cst_5 = arith.constant 1.000000e+00 : f32
    %11 = vector.broadcast %cst_5 : f32 to vector<1x256xf32>
    %12 = arith.addf %11, %10 : vector<1x256xf32>
    %13 = vector.broadcast %9 : vector<16x1xf32> to vector<16x256xf32>
    %14 = arith.mulf %1, %13 : vector<16x256xf32>
    %15 = vector.broadcast %12 : vector<1x256xf32> to vector<16x256xf32>
    %16 = arith.mulf %14, %15 : vector<16x256xf32>
    %17 = arith.truncf %16 : vector<16x256xf32> to vector<16x256xbf16>
    %c0_6 = arith.constant 0 : index
    %c0_7 = arith.constant 0 : index
    %18 = vector.load %arg3[%c0_6, %c0_7] : memref<16x256xbf16, #tpu.memory_space<vmem>>, vector<16x256xbf16>
    tpu.vector_store %arg3[%c0_6, %c0_7], %17 {strides = array<i32>} : memref<16x256xbf16, #tpu.memory_space<vmem>>, vector<16x256xbf16>,
    return
  }
  func.func @transform_0(%arg0: i32) -> (i32, i32) {
    %c0_i32 = arith.constant 0 : i32
    %c0_i32_0 = arith.constant 0 : i32
    return %arg0, %c0_i32 : i32, i32
  }
  func.func @transform_1(%arg0: i32) -> (i32, i32) {
    %c0_i32 = arith.constant 0 : i32
    %c0_i32_0 = arith.constant 0 : i32
    %c0_i32_1 = arith.constant 0 : i32
    return %c0_i32, %c0_i32_0 : i32, i32
  }
  func.func @transform_2(%arg0: i32) -> (i32, i32) {
    %c0_i32 = arith.constant 0 : i32
    %c0_i32_0 = arith.constant 0 : i32
    return %arg0, %c0_i32 : i32, i32
  }
}

</mosaic_0001>

<bundles_post_ra>
// kernel: tpu_custom_call.1
= control target key start
LH: loop header
LB: loop body
LE: loop exit
PB: predicated region body
PF: predicated region fallthrough
CT: control target
= control target key end

     0   :  { %7 = vsyncpa [#allocation3], 0  ;;  %s228_s0 = inlined_call_operand.hbm [shape: bf16[16,256], index: 0, kind: input, shape index: {}]   ;;  %s229_s1 = inlined_call_operand.hbm [shape: f32[1,256], index: 1, kind: input, shape index: {}]   ;;  %s230_s2 = inlined_call_operand.hbm [shape: bf16[16,256], index: 2, kind: output, shape index: {}]  }
   0x1   :  { %8 = vsyncpa [#allocation6], 0 }
   0x2   :  { %9 = vsyncpa [#allocation4], 0  ;;  %s193_s9 = smov [#allocation2]  }
   0x3   :  { %s15_s10 = sshll.u32 %s193_s9, 4  ;;  %s16_s10 = int_to_ptr.vmem [resolvable:$true] %s15_s10 }
   0x4   :  { %s135_s11 = scalar_lea.vmem %s16_s10, 256  ;;  %p140_p1 = scmp.lt.s32.totalorder %s16_s10, %s16_s10 }
   0x5   :  { %p136_p0 = scmp.ne.s32.totalorder %s16_s10, %s135_s11  ;;  %p141_p2 = scmp.lt.s32.totalorder %s135_s11, %s135_s11 }
   0x7   :  { %p142_p3 = por %p141_p2, %p140_p1 }
   0x9   :  { %p143_p4 = pnand %p142_p3, %p136_p0 }
   0xb   :  { %146 = shalt.err (!%p143_p4)
}
   0xc   :  { %s194_s12 = smov 128   ;;  %s195_s13 = smov 8  }
   0xd   :  { %21 = dma.hbm_to_vmem [thread:$0]  %s228_s0, 256, %s16_s10, [#allocation3], %s194_s12, %s194_s12, %s195_s13  }
   0xe   :  { %s196_s16 = smov [#allocation5]  }
   0xf   :  { %s28_s17 = sshll.u32 %s196_s16, 4  ;;  %s29_s17 = int_to_ptr.vmem [resolvable:$true] %s28_s17 }
  0x10   :  { %s155_s18 = scalar_lea.vmem %s29_s17, 32  ;;  %p160_p6 = scmp.lt.s32.totalorder %s29_s17, %s29_s17 }
  0x11   :  { %p156_p5 = scmp.ne.s32.totalorder %s29_s17, %s155_s18  ;;  %p161_p7 = scmp.lt.s32.totalorder %s155_s18, %s155_s18 }
  0x13   :  { %p162_p8 = por %p161_p7, %p160_p6 }
  0x15   :  { %p163_p9 = pnand %p162_p8, %p156_p5 }
  0x17   :  { %166 = shalt.err (!%p163_p9)
}
  0x18   :  { %31 = dma.hbm_to_vmem [thread:$0]  %s229_s1, 32, %s29_s17, [#allocation6]  }
  0x19   :  { %187 = dma.done.wait [#allocation3], 256  }
  0x1a   :  { %188 = vsyncadd [#allocation3], 4294967040 }
  0x1b   :  { %189 = dma.done.wait [#allocation6], 32  }
  0x1c   :  { %190 = vsyncadd [#allocation6], 4294967264  ;;  %v38_v0 = vld [vmem:[#allocation2] sm:$0xff]  ;;  %v39_v1 = vld [vmem:[#allocation2 + $0x8] sm:$0xff]  ;;  %v68_v17 = vlaneseq  ;;  %s197_s0 = smov [#allocation7]  }
  0x1d   :  { %v40_v2 = vunpack.c.l.bf16 %v38_v0  ;;  %v41_v3 = vunpack.c.h.bf16 %v38_v0  ;;  %v42_v4 = vunpack.c.l.bf16 %v39_v1  ;;  %v43_v5 = vunpack.c.h.bf16 %v39_v1  ;;  %v61_v20 = vld [vmem:[#allocation5] sm:$0x3]  ;;  %s101_s1 = sshll.u32 %s197_s0, 4  ;;  %s102_s1 = int_to_ptr.vmem [resolvable:$true] %s101_s1 }
  0x1e   :  { %v69_v19 = vshrl.u32 %v68_v17, 7  ;;  %v62_v21 = vadd.f32 1.0, %v61_v20  ;;  %s167_s21 = scalar_lea.vmem %s102_s1, 256  ;;  %p172_p11 = scmp.lt.s32.totalorder %s102_s1, %s102_s1 }
  0x1f   :  { %v44_v6 = vmul.f32 %v40_v2, %v40_v2  ;;  %v45_v7 = vmul.f32 %v41_v3, %v41_v3  ;;  %v46_v8 = vmul.f32 %v42_v4, %v42_v4  ;;  %v47_v9 = vmul.f32 %v43_v5, %v43_v5  ;;  %p168_p10 = scmp.ne.s32.totalorder %s102_s1, %s167_s21  ;;  %p173_p12 = scmp.lt.s32.totalorder %s167_s21, %s167_s21 }
  0x20   :  { %v70_v22 = vsub.s32 0, %v69_v19  ;;  %v74_v23 = vsub.s32 1, %v69_v19 }
  0x21   :  { %v48_v10 = vadd.f32 %v45_v7, %v44_v6  ;;  %v51_v11 = vadd.f32 %v47_v9, %v46_v8  ;;  %p174_p13 = por %p173_p12, %p172_p11 }
  0x22   :  { %v71_v24 = vrot.slane %v62_v21, %v70_v22  ;;  %v75_v25 = vrot.slane %v62_v21, %v74_v23 }
  0x23   :  { %49 = vadd.xlane.f32.xlu0 %v48_v10  ;;  %p175_p0 = pnand %p174_p13, %p168_p10 }
  0x27   :  { %52 = vadd.xlane.f32.xlu0 %v51_v11 }
  0xac   :  { %v50_v12 = vpop.xlane.xlu0 %49 }
  0xad   :  { %v55_v13 = vmul.f32 0.00390625, %v50_v12 }
  0xaf   :  { %v57_v14 = vadd.f32 1e-06, %v55_v13 }
  0xb0   :  { %v53_v15 = vpop.xlane.xlu0 %52 }
  0xb1   :  { %123 = vrsqrt.f32 %v57_v14  ;;  %v56_v16 = vmul.f32 0.00390625, %v53_v15 }
  0xb3   :  { %v58_v18 = vadd.f32 1e-06, %v56_v16 }
  0xb5   :  { %125 = vrsqrt.f32 %v58_v18 }
  0xbe   :  { %v124_v26 = vpop.eup %123 }
  0xbf   :  { %v63_v27 = vmul.f32 %v124_v26, %v40_v2  ;;  %v64_v28 = vmul.f32 %v124_v26, %v41_v3 }
  0xc1   :  { %v78_v29 = vmul.f32 %v71_v24, %v63_v27  ;;  %v79_v30 = vmul.f32 %v75_v25, %v64_v28 }
  0xc2   :  { %v126_v31 = vpop.eup %125 }
  0xc3   :  { %v65_v32 = vmul.f32 %v126_v31, %v42_v4  ;;  %v66_v33 = vmul.f32 %v126_v31, %v43_v5  ;;  %v116_v34 = vpack.c.bf16 %v79_v30, %v78_v29 }
  0xc5   :  { %v80_v35 = vmul.f32 %v71_v24, %v65_v32  ;;  %v81_v36 = vmul.f32 %v75_v25, %v66_v33  ;;  %94 = vst [vmem:[#allocation7] sm:$0xff] %v116_v34 }
  0xc7   :  { %v117_v37 = vpack.c.bf16 %v81_v36, %v80_v35 }
  0xc9   :  { %95 = vst [vmem:[#allocation7 + $0x8] sm:$0xff] %v117_v37 }
  0xca   :  { %178 = shalt.err (!%p175_p0)
}
  0xcb   :  { %107 = dma.vmem_to_hbm [thread:$0]  %s102_s1, 256, %s230_s2, [#allocation4], %s194_s12, %s194_s12, %s195_s13  }
  0xcc   :  { %191 = dma.done.wait [#allocation4], 256  }
  0xcd   :  { %192 = vsyncadd [#allocation4], 4294967040 }
  0xce   :  { %111 = vsyncpa [#allocation3], 1 }
  0xcf   :  { %112 = vsyncpa [#allocation6], 1 }
  0xd0   :  { %113 = vsyncpa [#allocation4], 1 }

</bundles_post_ra>
